<compile_context>
chip_gen: v6e
topology: v6e:2x2x1
jax: 0.10.0
libtpu: 0.0.40
codegen_flags: <defaults>
</compile_context>

<pallas_src>
import jax
import jax.numpy as jnp
import numpy as np
from jax.experimental import pallas as pl
from jax.experimental.pallas import tpu as pltpu

_LN_EPS = 1e-5
_INV_SQRT2 = 0.7071067811865476


def _layernorm(x, gamma, beta):
    # PyTorch nn.LayerNorm: biased variance, eps=1e-5.
    # Fused single pass: sum and sum-of-squares together, var = E[x^2] - mean^2.
    inv_n = jnp.float32(1.0 / x.shape[-1])
    s = jnp.sum(x, axis=-1, keepdims=True)
    s2 = jnp.sum(x * x, axis=-1, keepdims=True)
    mean = s * inv_n
    var = jnp.maximum(s2 * inv_n - mean * mean, 0.0)
    return (x - mean) * jax.lax.rsqrt(var + _LN_EPS) * gamma + beta


def _gelu_exact(x):
    # nn.GELU() default = exact erf formulation (kept in f32).
    return 0.5 * x * (1.0 + jax.lax.erf(x * jnp.float32(_INV_SQRT2)))


def mixer_kernel(x_ref,
                 g1_ref, b1_ref, wt1_ref, bt1_ref, wt2_ref, bt2_ref,
                 g2_ref, b2_ref, wc1t_ref, bc1_ref, wc2t_ref, bc2_ref,
                 o_ref):
    TB, C, N = x_ref.shape
    Et = wt1_ref.shape[0]

    x = x_ref[...].reshape(TB * C, N)                            # f32

    # ---- token mixing: LN -> Linear(num_token->Et) -> GELU -> Linear(Et->num_token)
    y = _layernorm(x, g1_ref[...], b1_ref[...])                  # (TB*C, N) f32
    y3 = y.reshape(TB, C, N).astype(jnp.bfloat16)
    w1 = jnp.broadcast_to(wt1_ref[...], (TB, Et, C))             # bf16
    h = jnp.einsum('bec,bcn->ben', w1, y3,
                   preferred_element_type=jnp.float32) + bt1_ref[...]   # (TB, Et, N) f32
    h = _gelu_exact(h)
    w2 = jnp.broadcast_to(wt2_ref[...], (TB, C, Et))             # bf16
    tmix = jnp.einsum('bce,ben->bcn', w2, h.astype(jnp.bfloat16),
                      preferred_element_type=jnp.float32) + bt2_ref[...]  # (TB, C, N)
    x1 = x + tmix.reshape(TB * C, N)                             # residual in f32

    # ---- channel mixing: LN -> Linear(token_dim->Ec) -> GELU -> Linear(Ec->token_dim)
    z = _layernorm(x1, g2_ref[...], b2_ref[...])                 # (TB*C, N) f32
    c = jnp.dot(z.astype(jnp.bfloat16), wc1t_ref[...],
                preferred_element_type=jnp.float32) + bc1_ref[...]        # (TB*C, Ec)
    c = _gelu_exact(c)
    cmix = jnp.dot(c.astype(jnp.bfloat16), wc2t_ref[...],
                   preferred_element_type=jnp.float32) + bc2_ref[...]     # (TB*C, N)

    o_ref[...] = (x1 + cmix).reshape(TB, C, N).astype(o_ref.dtype)


def _pick_block_batch(B, C, N, Et, Ec):
    """Largest batch block that fits a conservative VMEM budget, keeping >=2 grid steps."""
    # rough per-batch-element in-kernel footprint: f32 activations + bf16 broadcast weights
    per_b = 4 * (8 * C * N + 2 * Et * N + 2 * C * Ec) + 2 * (2 * Et * C)
    weight_bytes = 2 * (2 * Et * C + 2 * N * Ec)
    budget = (40 << 20) - weight_bytes            # headroom inside v7x's 64 MiB VMEM
    tb = max(1, budget // max(per_b, 1))
    if B >= 2:
        tb = min(tb, B // 2)                      # keep >=2 grid steps (v7x: 2 TCs)
    tb = max(1, min(tb, B))
    while B % tb:                                 # exact divisor of B for clean tiling
        tb -= 1
    return int(tb)


def feature_mixer_layer(x, params):
    """x: (B, C, N) float32; params: dict of weights (see init_params)."""
    B, C, N = x.shape
    Et = params["wt1"].shape[0]
    Ec = params["wc1"].shape[0]

    # bf16 MXU operands (accumulation happens in f32 inside the kernel).
    wt1 = params["wt1"].astype(jnp.bfloat16)          # (Et, C)
    wt2 = params["wt2"].astype(jnp.bfloat16)          # (C, Et)
    wc1t = params["wc1"].T.astype(jnp.bfloat16)       # (N, Ec)
    wc2t = params["wc2"].T.astype(jnp.bfloat16)       # (Ec, N)
    # f32 LayerNorm params / biases, pre-shaped for in-kernel broadcasting.
    g1 = params["g1"].reshape(1, N)
    b1 = params["b1"].reshape(1, N)
    bt1 = params["bt1"].reshape(Et, 1)
    bt2 = params["bt2"].reshape(C, 1)
    g2 = params["g2"].reshape(1, N)
    b2 = params["b2"].reshape(1, N)
    bc1 = params["bc1"].reshape(1, Ec)
    bc2 = params["bc2"].reshape(1, N)

    TB = _pick_block_batch(B, C, N, Et, Ec)
    grid = (B // TB,)

    def const_spec(shape):
        # Constant block index -> single buffer: never-changing weights don't need
        # double-buffering, which halves their resident VMEM footprint.
        return pl.BlockSpec(shape, lambda b: (0,) * len(shape),
                            pipeline_mode=pl.Buffered(1))

    in_specs = [
        pl.BlockSpec((TB, C, N), lambda b: (b, 0, 0)),   # x
        const_spec((1, N)), const_spec((1, N)),          # g1, b1
        const_spec((Et, C)), const_spec((Et, 1)),        # wt1, bt1
        const_spec((C, Et)), const_spec((C, 1)),         # wt2, bt2
        const_spec((1, N)), const_spec((1, N)),          # g2, b2
        const_spec((N, Ec)), const_spec((1, Ec)),        # wc1t, bc1
        const_spec((Ec, N)), const_spec((1, N)),         # wc2t, bc2
    ]

    # Explicit VMEM budget: bf16 weights (single-buffered) + double-buffered x/out
    # blocks + f32 intermediates + broadcast token-mix weights. Capped at 64 MiB (v7x).
    weight_bytes = 2 * (2 * Et * C + 2 * N * Ec) + 4 * (4 * N + Et + C + Ec)
    act_bytes = 4 * TB * (8 * C * N + 2 * Et * N + 2 * C * Ec) + 4 * TB * Et * C
    vmem_limit = int(min(64 << 20, max(2 * (weight_bytes + act_bytes), 32 << 20)))

    flops = 4 * B * C * N * (Et + Ec)              # the four dense matmuls (fwd)
    transcendentals = B * (Et * N + C * Ec)        # erf per GELU element
    bytes_accessed = 2 * B * C * N * 4 + weight_bytes

    return pl.pallas_call(
        mixer_kernel,
        out_shape=jax.ShapeDtypeStruct((B, C, N), x.dtype),
        grid_spec=pltpu.PrefetchScalarGridSpec(
            num_scalar_prefetch=0,
            grid=grid,
            in_specs=in_specs,
            out_specs=pl.BlockSpec((TB, C, N), lambda b: (b, 0, 0)),
        ),
        compiler_params=pltpu.CompilerParams(
            dimension_semantics=("parallel",),
            vmem_limit_bytes=vmem_limit),
        cost_estimate=pl.CostEstimate(flops=flops,
                                      transcendentals=transcendentals,
                                      bytes_accessed=bytes_accessed),
    )(x, g1, b1, wt1, bt1, wt2, bt2, g2, b2, wc1t, bc1, wc2t, bc2)


def reference(x, p):
    """Plain-JAX (f32, HIGHEST precision) reference of the PyTorch forward."""
    hp = jax.lax.Precision.HIGHEST

    def ln(v, g, b):
        m = jnp.mean(v, axis=-1, keepdims=True)
        var = jnp.mean((v - m) ** 2, axis=-1, keepdims=True)
        return (v - m) * jax.lax.rsqrt(var + _LN_EPS) * g + b

    gelu = lambda v: 0.5 * v * (1.0 + jax.lax.erf(v * _INV_SQRT2))

    # mix_t
    y = ln(x, p["g1"], p["b1"])                                   # (B, C, N)
    t = jnp.swapaxes(y, 1, 2)                                     # (B, N, C)
    t = jnp.einsum("bnc,ec->bne", t, p["wt1"], precision=hp) + p["bt1"]
    t = gelu(t)
    t = jnp.einsum("bne,ce->bnc", t, p["wt2"], precision=hp) + p["bt2"]
    x1 = x + jnp.swapaxes(t, 1, 2)
    # mix_c
    z = ln(x1, p["g2"], p["b2"])
    c = jnp.einsum("bcn,en->bce", z, p["wc1"], precision=hp) + p["bc1"]
    c = gelu(c)
    c = jnp.einsum("bce,ne->bcn", c, p["wc2"], precision=hp) + p["bc2"]
    return x1 + c


def init_params(key, num_token, token_dim, mlp_ratio):
    Et = int(num_token * mlp_ratio)
    Ec = int(token_dim * mlp_ratio)
    ks = jax.random.split(key, 4)
    std = 0.02
    return {
        # LayerNorm(token_dim) x2 : weight=1, bias=0
        "g1": jnp.ones((token_dim,), jnp.float32),
        "b1": jnp.zeros((token_dim,), jnp.float32),
        "g2": jnp.ones((token_dim,), jnp.float32),
        "b2": jnp.zeros((token_dim,), jnp.float32),
        # mix_t linears (PyTorch (out, in) convention), trunc_normal std=0.02, zero bias
        "wt1": std * jax.random.truncated_normal(ks[0], -2., 2., (Et, num_token), jnp.float32),
        "bt1": jnp.zeros((Et,), jnp.float32),
        "wt2": std * jax.random.truncated_normal(ks[1], -2., 2., (num_token, Et), jnp.float32),
        "bt2": jnp.zeros((num_token,), jnp.float32),
        # mix_c linears
        "wc1": std * jax.random.truncated_normal(ks[2], -2., 2., (Ec, token_dim), jnp.float32),
        "bc1": jnp.zeros((Ec,), jnp.float32),
        "wc2": std * jax.random.truncated_normal(ks[3], -2., 2., (token_dim, Ec), jnp.float32),
        "bc2": jnp.zeros((token_dim,), jnp.float32),
    }


if __name__ == "__main__":
    B, num_token, token_dim, mlp_ratio = 2, 4, 16, 2

    key = jax.random.PRNGKey(0)
    kx, kp = jax.random.split(key)
    x = jax.random.normal(kx, (B, num_token, token_dim), jnp.float32)
    params = init_params(kp, num_token, token_dim, mlp_ratio)

    out = jax.block_until_ready(feature_mixer_layer(x, params))

    ref = jax.block_until_ready(reference(x, params))
    # bf16 MXU operands with f32 accumulation -> relaxed (but meaningful) tolerance.
    np.testing.assert_allclose(np.asarray(out), np.asarray(ref),
                               rtol=1e-2, atol=5e-3)
    print("KERNEL_OK")
</pallas_src>

<mosaic_0001>
module attributes {stable_mosaic.version = 11 : i64} {
  func.func @mixer_kernel(%arg0: i32, %arg1: memref<1x4x16xf32, #tpu.memory_space<vmem>>, %arg2: memref<1x16xf32, #tpu.memory_space<vmem>>, %arg3: memref<1x16xf32, #tpu.memory_space<vmem>>, %arg4: memref<8x4xbf16, #tpu.memory_space<vmem>>, %arg5: memref<8x1xf32, #tpu.memory_space<vmem>>, %arg6: memref<4x8xbf16, #tpu.memory_space<vmem>>, %arg7: memref<4x1xf32, #tpu.memory_space<vmem>>, %arg8: memref<1x16xf32, #tpu.memory_space<vmem>>, %arg9: memref<1x16xf32, #tpu.memory_space<vmem>>, %arg10: memref<16x32xbf16, #tpu.memory_space<vmem>>, %arg11: memref<1x32xf32, #tpu.memory_space<vmem>>, %arg12: memref<32x16xbf16, #tpu.memory_space<vmem>>, %arg13: memref<1x16xf32, #tpu.memory_space<vmem>>, %arg14: memref<1x4x16xf32, #tpu.memory_space<vmem>>) attributes {dimension_semantics = [#tpu.dimension_semantics<parallel>], iteration_bounds = array<i64: 2>, scalar_prefetch = 0 : i64, scratch_operands = 0 : i64, tpu.core_type = #tpu.core_type<tc>, window_params = [{transform_indices = @transform_0, window_bounds = array<i64: 1, 4, 16>}, {pipeline_mode = #tpu.pipeline_mode<synchronous>, transform_indices = @transform_1, window_bounds = array<i64: 1, 16>}, {pipeline_mode = #tpu.pipeline_mode<synchronous>, transform_indices = @transform_2, window_bounds = array<i64: 1, 16>}, {pipeline_mode = #tpu.pipeline_mode<synchronous>, transform_indices = @transform_3, window_bounds = array<i64: 8, 4>}, {pipeline_mode = #tpu.pipeline_mode<synchronous>, transform_indices = @transform_4, window_bounds = array<i64: 8, 1>}, {pipeline_mode = #tpu.pipeline_mode<synchronous>, transform_indices = @transform_5, window_bounds = array<i64: 4, 8>}, {pipeline_mode = #tpu.pipeline_mode<synchronous>, transform_indices = @transform_6, window_bounds = array<i64: 4, 1>}, {pipeline_mode = #tpu.pipeline_mode<synchronous>, transform_indices = @transform_7, window_bounds = array<i64: 1, 16>}, {pipeline_mode = #tpu.pipeline_mode<synchronous>, transform_indices = @transform_8, window_bounds = array<i64: 1, 16>}, {pipeline_mode = #tpu.pipeline_mode<synchronous>, transform_indices = @transform_9, window_bounds = array<i64: 16, 32>}, {pipeline_mode = #tpu.pipeline_mode<synchronous>, transform_indices = @transform_10, window_bounds = array<i64: 1, 32>}, {pipeline_mode = #tpu.pipeline_mode<synchronous>, transform_indices = @transform_11, window_bounds = array<i64: 32, 16>}, {pipeline_mode = #tpu.pipeline_mode<synchronous>, transform_indices = @transform_12, window_bounds = array<i64: 1, 16>}, {transform_indices = @transform_13, window_bounds = array<i64: 1, 4, 16>}]} {
    %c0 = arith.constant 0 : index
    %c0_0 = arith.constant 0 : index
    %c0_1 = arith.constant 0 : index
    %0 = vector.load %arg1[%c0, %c0_0, %c0_1] : memref<1x4x16xf32, #tpu.memory_space<vmem>>, vector<1x4x16xf32>
    %1 = vector.shape_cast %0 : vector<1x4x16xf32> to vector<4x16xf32>
    %c0_2 = arith.constant 0 : index
    %c0_3 = arith.constant 0 : index
    %2 = vector.load %arg2[%c0_2, %c0_3] : memref<1x16xf32, #tpu.memory_space<vmem>>, vector<1x16xf32>
    %c0_4 = arith.constant 0 : index
    %c0_5 = arith.constant 0 : index
    %3 = vector.load %arg3[%c0_4, %c0_5] : memref<1x16xf32, #tpu.memory_space<vmem>>, vector<1x16xf32>
    %cst = arith.constant dense<0.000000e+00> : vector<4xf32>
    %4 = vector.multi_reduction <add>, %1, %cst [1] : vector<4x16xf32> to vector<4xf32>
    %5 = vector.shape_cast %4 : vector<4xf32> to vector<4x1xf32>
    %6 = arith.mulf %1, %1 : vector<4x16xf32>
    %cst_6 = arith.constant dense<0.000000e+00> : vector<4xf32>
    %7 = vector.multi_reduction <add>, %6, %cst_6 [1] : vector<4x16xf32> to vector<4xf32>
    %8 = vector.shape_cast %7 : vector<4xf32> to vector<4x1xf32>
    %cst_7 = arith.constant 6.250000e-02 : f32
    %9 = vector.broadcast %cst_7 : f32 to vector<4x1xf32>
    %10 = arith.mulf %5, %9 : vector<4x1xf32>
    %cst_8 = arith.constant 6.250000e-02 : f32
    %11 = vector.broadcast %cst_8 : f32 to vector<4x1xf32>
    %12 = arith.mulf %8, %11 : vector<4x1xf32>
    %13 = arith.mulf %10, %10 : vector<4x1xf32>
    %14 = arith.subf %12, %13 : vector<4x1xf32>
    %cst_9 = arith.constant 0.000000e+00 : f32
    %15 = vector.broadcast %cst_9 : f32 to vector<4x1xf32>
    %16 = arith.maximumf %14, %15 : vector<4x1xf32>
    %17 = vector.broadcast %10 : vector<4x1xf32> to vector<4x16xf32>
    %18 = arith.subf %1, %17 : vector<4x16xf32>
    %cst_10 = arith.constant 9.99999974E-6 : f32
    %19 = vector.broadcast %cst_10 : f32 to vector<4x1xf32>
    %20 = arith.addf %16, %19 : vector<4x1xf32>
    %21 = math.rsqrt %20 : vector<4x1xf32>
    %22 = vector.broadcast %21 : vector<4x1xf32> to vector<4x16xf32>
    %23 = arith.mulf %18, %22 : vector<4x16xf32>
    %24 = vector.broadcast %2 : vector<1x16xf32> to vector<4x16xf32>
    %25 = arith.mulf %23, %24 : vector<4x16xf32>
    %26 = vector.broadcast %3 : vector<1x16xf32> to vector<4x16xf32>
    %27 = arith.addf %25, %26 : vector<4x16xf32>
    %28 = vector.shape_cast %27 : vector<4x16xf32> to vector<1x4x16xf32>
    %29 = arith.truncf %28 : vector<1x4x16xf32> to vector<1x4x16xbf16>
    %c0_11 = arith.constant 0 : index
    %c0_12 = arith.constant 0 : index
    %30 = vector.load %arg4[%c0_11, %c0_12] : memref<8x4xbf16, #tpu.memory_space<vmem>>, vector<8x4xbf16>
    %31 = vector.shape_cast %30 : vector<8x4xbf16> to vector<1x8x4xbf16>
    "tpu.trace_start"() <{level = 10 : i32, message = "bec,bcn->ben"}> : () -> ()
    %cst_13 = arith.constant dense<0.000000e+00> : vector<1x8x16xf32>
    %32 = tpu.matmul %31, %29, %cst_13 {dimension_numbers = #tpu.dot_dimension_numbers<[2], [1], [1], [2], [0, 0, 0, 1, 1, 2], [0], [0]>} : vector<1x8x4xbf16>, vector<1x4x16xbf16>, vector<1x8x16xf32> -> vector<1x8x16xf32>
    "tpu.trace_stop"() : () -> ()
    %c0_14 = arith.constant 0 : index
    %c0_15 = arith.constant 0 : index
    %33 = vector.load %arg5[%c0_14, %c0_15] : memref<8x1xf32, #tpu.memory_space<vmem>>, vector<8x1xf32>
    %34 = vector.shape_cast %33 : vector<8x1xf32> to vector<1x8x1xf32>
    %35 = vector.broadcast %34 : vector<1x8x1xf32> to vector<1x8x16xf32>
    %36 = arith.addf %32, %35 : vector<1x8x16xf32>
    %cst_16 = arith.constant 5.000000e-01 : f32
    %37 = vector.broadcast %cst_16 : f32 to vector<1x8x16xf32>
    %38 = arith.mulf %37, %36 : vector<1x8x16xf32>
    %cst_17 = arith.constant 0.707106769 : f32
    %39 = vector.broadcast %cst_17 : f32 to vector<1x8x16xf32>
    %40 = arith.mulf %36, %39 : vector<1x8x16xf32>
    %41 = math.erf %40 : vector<1x8x16xf32>
    %cst_18 = arith.constant 1.000000e+00 : f32
    %42 = vector.broadcast %cst_18 : f32 to vector<1x8x16xf32>
    %43 = arith.addf %42, %41 : vector<1x8x16xf32>
    %44 = arith.mulf %38, %43 : vector<1x8x16xf32>
    %c0_19 = arith.constant 0 : index
    %c0_20 = arith.constant 0 : index
    %45 = vector.load %arg6[%c0_19, %c0_20] : memref<4x8xbf16, #tpu.memory_space<vmem>>, vector<4x8xbf16>
    %46 = vector.shape_cast %45 : vector<4x8xbf16> to vector<1x4x8xbf16>
    %47 = arith.truncf %44 : vector<1x8x16xf32> to vector<1x8x16xbf16>
    "tpu.trace_start"() <{level = 10 : i32, message = "bce,ben->bcn"}> : () -> ()
    %cst_21 = arith.constant dense<0.000000e+00> : vector<1x4x16xf32>
    %48 = tpu.matmul %46, %47, %cst_21 {dimension_numbers = #tpu.dot_dimension_numbers<[2], [1], [1], [2], [0, 0, 0, 1, 1, 2], [0], [0]>} : vector<1x4x8xbf16>, vector<1x8x16xbf16>, vector<1x4x16xf32> -> vector<1x4x16xf32>
    "tpu.trace_stop"() : () -> ()
    %c0_22 = arith.constant 0 : index
    %c0_23 = arith.constant 0 : index
    %49 = vector.load %arg7[%c0_22, %c0_23] : memref<4x1xf32, #tpu.memory_space<vmem>>, vector<4x1xf32>
    %50 = vector.shape_cast %49 : vector<4x1xf32> to vector<1x4x1xf32>
    %51 = vector.broadcast %50 : vector<1x4x1xf32> to vector<1x4x16xf32>
    %52 = arith.addf %48, %51 : vector<1x4x16xf32>
    %53 = vector.shape_cast %52 : vector<1x4x16xf32> to vector<4x16xf32>
    %54 = arith.addf %1, %53 : vector<4x16xf32>
    %c0_24 = arith.constant 0 : index
    %c0_25 = arith.constant 0 : index
    %55 = vector.load %arg8[%c0_24, %c0_25] : memref<1x16xf32, #tpu.memory_space<vmem>>, vector<1x16xf32>
    %c0_26 = arith.constant 0 : index
    %c0_27 = arith.constant 0 : index
    %56 = vector.load %arg9[%c0_26, %c0_27] : memref<1x16xf32, #tpu.memory_space<vmem>>, vector<1x16xf32>
    %cst_28 = arith.constant dense<0.000000e+00> : vector<4xf32>
    %57 = vector.multi_reduction <add>, %54, %cst_28 [1] : vector<4x16xf32> to vector<4xf32>
    %58 = vector.shape_cast %57 : vector<4xf32> to vector<4x1xf32>
    %59 = arith.mulf %54, %54 : vector<4x16xf32>
    %cst_29 = arith.constant dense<0.000000e+00> : vector<4xf32>
    %60 = vector.multi_reduction <add>, %59, %cst_29 [1] : vector<4x16xf32> to vector<4xf32>
    %61 = vector.shape_cast %60 : vector<4xf32> to vector<4x1xf32>
    %cst_30 = arith.constant 6.250000e-02 : f32
    %62 = vector.broadcast %cst_30 : f32 to vector<4x1xf32>
    %63 = arith.mulf %58, %62 : vector<4x1xf32>
    %cst_31 = arith.constant 6.250000e-02 : f32
    %64 = vector.broadcast %cst_31 : f32 to vector<4x1xf32>
    %65 = arith.mulf %61, %64 : vector<4x1xf32>
    %66 = arith.mulf %63, %63 : vector<4x1xf32>
    %67 = arith.subf %65, %66 : vector<4x1xf32>
    %cst_32 = arith.constant 0.000000e+00 : f32
    %68 = vector.broadcast %cst_32 : f32 to vector<4x1xf32>
    %69 = arith.maximumf %67, %68 : vector<4x1xf32>
    %70 = vector.broadcast %63 : vector<4x1xf32> to vector<4x16xf32>
    %71 = arith.subf %54, %70 : vector<4x16xf32>
    %cst_33 = arith.constant 9.99999974E-6 : f32
    %72 = vector.broadcast %cst_33 : f32 to vector<4x1xf32>
    %73 = arith.addf %69, %72 : vector<4x1xf32>
    %74 = math.rsqrt %73 : vector<4x1xf32>
    %75 = vector.broadcast %74 : vector<4x1xf32> to vector<4x16xf32>
    %76 = arith.mulf %71, %75 : vector<4x16xf32>
    %77 = vector.broadcast %55 : vector<1x16xf32> to vector<4x16xf32>
    %78 = arith.mulf %76, %77 : vector<4x16xf32>
    %79 = vector.broadcast %56 : vector<1x16xf32> to vector<4x16xf32>
    %80 = arith.addf %78, %79 : vector<4x16xf32>
    %81 = arith.truncf %80 : vector<4x16xf32> to vector<4x16xbf16>
    %c0_34 = arith.constant 0 : index
    %c0_35 = arith.constant 0 : index
    %82 = vector.load %arg10[%c0_34, %c0_35] : memref<16x32xbf16, #tpu.memory_space<vmem>>, vector<16x32xbf16>
    %cst_36 = arith.constant dense<0.000000e+00> : vector<4x32xf32>
    %83 = tpu.matmul %81, %82, %cst_36 {dimension_numbers = #tpu.dot_dimension_numbers<[1], [0], [0], [1], [0, 0, 1, 1], [], []>} : vector<4x16xbf16>, vector<16x32xbf16>, vector<4x32xf32> -> vector<4x32xf32>
    %c0_37 = arith.constant 0 : index
    %c0_38 = arith.constant 0 : index
    %84 = vector.load %arg11[%c0_37, %c0_38] : memref<1x32xf32, #tpu.memory_space<vmem>>, vector<1x32xf32>
    %85 = vector.broadcast %84 : vector<1x32xf32> to vector<4x32xf32>
    %86 = arith.addf %83, %85 : vector<4x32xf32>
    %cst_39 = arith.constant 5.000000e-01 : f32
    %87 = vector.broadcast %cst_39 : f32 to vector<4x32xf32>
    %88 = arith.mulf %87, %86 : vector<4x32xf32>
    %cst_40 = arith.constant 0.707106769 : f32
    %89 = vector.broadcast %cst_40 : f32 to vector<4x32xf32>
    %90 = arith.mulf %86, %89 : vector<4x32xf32>
    %91 = math.erf %90 : vector<4x32xf32>
    %cst_41 = arith.constant 1.000000e+00 : f32
    %92 = vector.broadcast %cst_41 : f32 to vector<4x32xf32>
    %93 = arith.addf %92, %91 : vector<4x32xf32>
    %94 = arith.mulf %88, %93 : vector<4x32xf32>
    %95 = arith.truncf %94 : vector<4x32xf32> to vector<4x32xbf16>
    %c0_42 = arith.constant 0 : index
    %c0_43 = arith.constant 0 : index
    %96 = vector.load %arg12[%c0_42, %c0_43] : memref<32x16xbf16, #tpu.memory_space<vmem>>, vector<32x16xbf16>
    %cst_44 = arith.constant dense<0.000000e+00> : vector<4x16xf32>
    %97 = tpu.matmul %95, %96, %cst_44 {dimension_numbers = #tpu.dot_dimension_numbers<[1], [0], [0], [1], [0, 0, 1, 1], [], []>} : vector<4x32xbf16>, vector<32x16xbf16>, vector<4x16xf32> -> vector<4x16xf32>
    %c0_45 = arith.constant 0 : index
    %c0_46 = arith.constant 0 : index
    %98 = vector.load %arg13[%c0_45, %c0_46] : memref<1x16xf32, #tpu.memory_space<vmem>>, vector<1x16xf32>
    %99 = vector.broadcast %98 : vector<1x16xf32> to vector<4x16xf32>
    %100 = arith.addf %97, %99 : vector<4x16xf32>
    %101 = arith.addf %54, %100 : vector<4x16xf32>
    %102 = vector.shape_cast %101 : vector<4x16xf32> to vector<1x4x16xf32>
    %c0_47 = arith.constant 0 : index
    %c0_48 = arith.constant 0 : index
    %c0_49 = arith.constant 0 : index
    %103 = vector.load %arg14[%c0_47, %c0_48, %c0_49] : memref<1x4x16xf32, #tpu.memory_space<vmem>>, vector<1x4x16xf32>
    tpu.vector_store %arg14[%c0_47, %c0_48, %c0_49], %102 {strides = array<i32>} : memref<1x4x16xf32, #tpu.memory_space<vmem>>, vector<1x4x16xf32>,
    return
  }
  func.func @transform_0(%arg0: i32) -> (i32, i32, i32) {
    %c0_i32 = arith.constant 0 : i32
    %c0_i32_0 = arith.constant 0 : i32
    %c0_i32_1 = arith.constant 0 : i32
    return %arg0, %c0_i32, %c0_i32_0 : i32, i32, i32
  }
  func.func @transform_1(%arg0: i32) -> (i32, i32) {
    %c0_i32 = arith.constant 0 : i32
    %c0_i32_0 = arith.constant 0 : i32
    %c0_i32_1 = arith.constant 0 : i32
    return %c0_i32, %c0_i32_0 : i32, i32
  }
  func.func @transform_2(%arg0: i32) -> (i32, i32) {
    %c0_i32 = arith.constant 0 : i32
    %c0_i32_0 = arith.constant 0 : i32
    %c0_i32_1 = arith.constant 0 : i32
    return %c0_i32, %c0_i32_0 : i32, i32
  }
  func.func @transform_3(%arg0: i32) -> (i32, i32) {
    %c0_i32 = arith.constant 0 : i32
    %c0_i32_0 = arith.constant 0 : i32
    %c0_i32_1 = arith.constant 0 : i32
    return %c0_i32, %c0_i32_0 : i32, i32
  }
  func.func @transform_4(%arg0: i32) -> (i32, i32) {
    %c0_i32 = arith.constant 0 : i32
    %c0_i32_0 = arith.constant 0 : i32
    %c0_i32_1 = arith.constant 0 : i32
    return %c0_i32, %c0_i32_0 : i32, i32
  }
  func.func @transform_5(%arg0: i32) -> (i32, i32) {
    %c0_i32 = arith.constant 0 : i32
    %c0_i32_0 = arith.constant 0 : i32
    %c0_i32_1 = arith.constant 0 : i32
    return %c0_i32, %c0_i32_0 : i32, i32
  }
  func.func @transform_6(%arg0: i32) -> (i32, i32) {
    %c0_i32 = arith.constant 0 : i32
    %c0_i32_0 = arith.constant 0 : i32
    %c0_i32_1 = arith.constant 0 : i32
    return %c0_i32, %c0_i32_0 : i32, i32
  }
  func.func @transform_7(%arg0: i32) -> (i32, i32) {
    %c0_i32 = arith.constant 0 : i32
    %c0_i32_0 = arith.constant 0 : i32
    %c0_i32_1 = arith.constant 0 : i32
    return %c0_i32, %c0_i32_0 : i32, i32
  }
  func.func @transform_8(%arg0: i32) -> (i32, i32) {
    %c0_i32 = arith.constant 0 : i32
    %c0_i32_0 = arith.constant 0 : i32
    %c0_i32_1 = arith.constant 0 : i32
    return %c0_i32, %c0_i32_0 : i32, i32
  }
  func.func @transform_9(%arg0: i32) -> (i32, i32) {
    %c0_i32 = arith.constant 0 : i32
    %c0_i32_0 = arith.constant 0 : i32
    %c0_i32_1 = arith.constant 0 : i32
    return %c0_i32, %c0_i32_0 : i32, i32
  }
  func.func @transform_10(%arg0: i32) -> (i32, i32) {
    %c0_i32 = arith.constant 0 : i32
    %c0_i32_0 = arith.constant 0 : i32
    %c0_i32_1 = arith.constant 0 : i32
    return %c0_i32, %c0_i32_0 : i32, i32
  }
  func.func @transform_11(%arg0: i32) -> (i32, i32) {
    %c0_i32 = arith.constant 0 : i32
    %c0_i32_0 = arith.constant 0 : i32
    %c0_i32_1 = arith.constant 0 : i32
    return %c0_i32, %c0_i32_0 : i32, i32
  }
  func.func @transform_12(%arg0: i32) -> (i32, i32) {
    %c0_i32 = arith.constant 0 : i32
    %c0_i32_0 = arith.constant 0 : i32
    %c0_i32_1 = arith.constant 0 : i32
    return %c0_i32, %c0_i32_0 : i32, i32
  }
  func.func @transform_13(%arg0: i32) -> (i32, i32, i32) {
    %c0_i32 = arith.constant 0 : i32
    %c0_i32_0 = arith.constant 0 : i32
    %c0_i32_1 = arith.constant 0 : i32
    return %arg0, %c0_i32, %c0_i32_0 : i32, i32, i32
  }
}

</mosaic_0001>

<bundles_post_ra>
// kernel: tpu_custom_call.1
= control target key start
LH: loop header
LB: loop body
LE: loop exit
PB: predicated region body
PF: predicated region fallthrough
CT: control target
= control target key end

     0   :  { %s1241_s0 = inlined_call_operand.vmem [shape: f32[2,4,16], index: 0, kind: input, shape index: {}]   ;;  %s1242_s1 = inlined_call_operand.vmem [shape: f32[1,16], index: 1, kind: input, shape index: {}]   ;;  %s1243_s2 = inlined_call_operand.vmem [shape: f32[1,16], index: 2, kind: input, shape index: {}]   ;;  %s1244_s3 = inlined_call_operand.vmem [shape: bf16[8,4], index: 3, kind: input, shape index: {}]   ;;  %s1245_s4 = inlined_call_operand.vmem [shape: f32[8,1], index: 4, kind: input, shape index: {}]   ;;  %s1246_s5 = inlined_call_operand.vmem [shape: bf16[4,8], index: 5, kind: input, shape index: {}]   ;;  %s1247_s6 = inlined_call_operand.vmem [shape: f32[4,1], index: 6, kind: input, shape index: {}]   ;;  %s1248_s7 = inlined_call_operand.vmem [shape: f32[1,16], index: 7, kind: input, shape index: {}]   ;;  %s1249_s8 = inlined_call_operand.vmem [shape: f32[1,16], index: 8, kind: input, shape index: {}]   ;;  %s1250_s9 = inlined_call_operand.vmem [shape: bf16[16,32], index: 9, kind: input, shape index: {}]   ;;  %s1251_s10 = inlined_call_operand.vmem [shape: f32[1,32], index: 10, kind: input, shape index: {}]   ;;  %s1252_s11 = inlined_call_operand.vmem [shape: bf16[32,16], index: 11, kind: input, shape index: {}]   ;;  %s1253_s12 = inlined_call_operand.vmem [shape: f32[1,16], index: 12, kind: input, shape index: {}]   ;;  %s1254_s13 = inlined_call_operand.hbm [shape: f32[2,4,16], index: 13, kind: output, shape index: {}]  }
   0x1   :  { %1255 = sst [smem:[#allocation5_spill]] %s1241_s0 }
   0x2   :  { %1256 = sst [smem:[#allocation6_spill]] %s1242_s1 }
   0x3   :  { %1257 = sst [smem:[#allocation7_spill]] %s1243_s2 }
   0x4   :  { %18 = vsyncpa [#allocation3], 0 }
   0x5   :  { %20 = vsyncpa [#allocation3 + $0x1], 0  ;;  %s1078_s25 = smov 0   ;;  %s1080_s26 = smov 0  }
   0x6   :  { %s1082_s27 = smov 0   ;;  %s1084_s28 = smov 0  }
   0x7 LB: > { %s1099_s29 = sadd.s32 4294967295, %s1002_s28   ;;  %s829_s30 = sadd.s32 4294967294, %s1002_s28   ;;  %s1002_s28 = sphi %s1084_s28, %s1266_s28   ;;  %s998_s27 = sphi %s1082_s27, %s1265_s27   ;;  %s994_s26 = sphi %s1080_s26, %s1264_s26   ;;  %s990_s25 = sphi %s1078_s25, %s1263_s25  }
   0x8   : > { %s1103_s14 = sadd.s32 1, %s1002_s28   ;;  %s311_s15 = sadd.s32 1, %s998_s27 }
   0x9   : > { %s308_s16 = ssub.s32 %s1002_s28, %s1103_s14  ;;  %p321_p0 = scmp.ne.s32.totalorder %s998_s27, %s994_s26 }
   0xa   : > { %p309_p1 = scmp.eq.s32.totalorder %s308_s16, 0  ;;  %p322_p2 = scmp.eq.s32.totalorder %s1099_s29, 1 }
   0xb   : > { %p327_p3 = scmp.ne.s32.totalorder %s994_s26, %s990_s25  ;;  %p328_p4 = scmp.eq.s32.totalorder %s829_s30, 1 }
   0xc   : > { %s1114_s17 = scalar_select %p309_p1, %s998_s27, %s311_s15  }
   0xd   : > { %p1116_p5 = por %p322_p2, %p321_p0  ;;  %p1120_p6 = por %p328_p4, %p327_p3 }
   0xe   : > { %p832_p7 = scmp.ge.s32.totalorder %s1002_s28, 1  ;;  %p389_p8 = scmp.lt.s32.totalorder %s1002_s28, 3 }
  0x10   : > { %p390_p9 = pnand %p832_p7, %p389_p8 }
  0x11   : > { %p432_p10 = scmp.lt.s32.totalorder (!%p390_p9), %s1099_s29, 1  ;;  %s1260_s0 = sld [smem:[#allocation5_spill]] (!%p390_p9) }
  0x12   : > { %393 = sbr.rel (%p390_p9) target bundleno = 1222 (0x4c6), region = 72  ;;  %s1261_s1 = sld [smem:[#allocation6_spill]] (!%p390_p9) }
  0x13   : > { %s1262_s2 = sld [smem:[#allocation7_spill]] (!%p390_p9)  ;;  %s429_s30 = sand.u32 (!%p390_p9), 1, %s994_s26  }
  0x14   : > { %s833_s15 = sshll.u32 (!%p390_p9), %s429_s30, 2  ;;  %s1007_s16 = smov (!%p390_p9), [#allocation2]  }
  0x15   : > { %s431_s22 = scalar_lea.vmem (!%p390_p9), [#allocation2], %s833_s15 }
  0x16   : > { %s770_s23 = sshll.u32 (!%p390_p9), %s431_s22, 4  ;;  %s1201_s23 = int_to_ptr.vmem [resolvable:$true] %s770_s23 }
  0x17   : > { %s433_s20 = scalar_select %p432_p10, %s1099_s29, 1  ;;  %vm440_vm0 = vcmask 125952   ;;  %v1004_v4 = vmov 0.0   ;;  %vm1005_vm1 = vmmov 0   ;;  %v473_v5 = vld [vmem:[%s1245_s4] sm:$0xff]  ;;  %v1006_v6 = vmov 0  }
  0x18   : > { %861 = vmatprep.subr.bf16.mxu0 %v1004_v4  ;;  %867 = vmatprep.subr.bf16.mxu1 %v1004_v4  ;;  %v534_v7 = vld [vmem:[%s1247_s6] sm:$0xf]  ;;  %vm483_vm2 = vcmask 1041408   ;;  %vm479_vm3 = vcmask 31744   ;;  %vm544_vm4 = vcmask 1043456   ;;  %vm540_vm5 = vcmask 64512  }
  0x19   : > { %s834_s21 = sshll.u32 %s433_s20, 2  ;;  %863 = vmatprep.mubr.msk.bf16.mxu0 %vm1005_vm1, %v1004_v4  ;;  %869 = vmatprep.mubr.msk.bf16.mxu1 %vm1005_vm1, %v1004_v4  ;;  %v835_v18 = vld [vmem:[%s1261_s1] ss:$0 sm:$0xff]  ;;  %vm637_vm6 = vcmask 130048   ;;  %vm710_vm7 = vcmask 261120   ;;  %s942_s15 = scalar_lea.vmem %s1201_s23, 64 }
  0x1a   : > { %s435_s24 = scalar_lea.vmem %s1260_s0, %s834_s21  ;;  %929 = vset.pattern.permute.xlu1 %v1006_v6  ;;  %930 = vset.pattern.permute.xlu0 %v1006_v6  ;;  %v836_v20 = vld [vmem:[%s1262_s2] ss:$0 sm:$0xff]  ;;  %s849_s21 = sshll.u32 %s1099_s29, 6 }
  0x1b   : > { %v1131_v0 = vld [vmem:[%s435_s24] sm:$0xf]  ;;  %476 = vperm.xlu1 %929, %v473_v5   ;;  %s1199_s1 = scalar_lea.hbm %s1254_s13, %s849_s21  ;;  %s757_s29 = scalar_lea.sflag [#allocation3], %s429_s30 }
  0x1c   : > { %v441_v1 = vsel %vm440_vm0, %v1131_v0, 0.0  ;;  %v444_v2 = vmul.f32 %v1131_v0, %v1131_v0  ;;  %v472_v25 = vld [vmem:[%s1244_s3] sm:$0xf]  ;;  %p943_p11 = scmp.ne.s32.totalorder %s1201_s23, %s942_s15  ;;  %s946_s20 = sshll.u32 %s1007_s16, 4  ;;  %s947_s20 = int_to_ptr.vmem [resolvable:$false] %s946_s20 }
  0x1d   : > { %442 = vadd.xlane.f32.xlu0 %v441_v1  ;;  %v532_v39 = vld [vmem:[%s1246_s5] sm:$0x3]  ;;  %s948_s0 = scalar_lea.vmem %s947_s20, 128  ;;  %p949_p0 = scmp.lt.s32.totalorder %s1201_s23, %s947_s20 }
  0x1e   : > { %v445_v3 = vsel %vm440_vm0, %v444_v2, 0.0  ;;  %v931_v50 = vld [vmem:[%s1250_s9] sm:$0xff]   ;;  %p944_p12 = pnand %p943_p11, %p1116_p5  ;;  %p950_p1 = scmp.lt.s32.totalorder %s948_s0, %s942_s15 }
  0x1f   : > { %537 = vperm.xlu1 %929, %v534_v7   ;;  %v839_v61 = vld [vmem:[%s1248_s7] ss:$0 sm:$0xff] }
  0x20   : > { %v840_v63 = vld [vmem:[%s1249_s8] ss:$0 sm:$0xff]  ;;  %p945_p13 = pneg %p944_p12  ;;  %p951_p2 = por %p950_p1, %p949_p0 }
  0x21   : > { %446 = vadd.xlane.f32.xlu0 %v445_v3  ;;  %v932_v3 = vld [vmem:[%s1252_s11 + $0x8] sm:$0xff]   ;;  %v933_v5 = vld [vmem:[%s1252_s11] sm:$0xff]  }
  0x22   : > { %v841_v6 = vld [vmem:[%s1251_s10] ss:$0 sm:$0xff]  ;;  %p952_p3 = pnand %p951_p2, %p945_p13 }
  0x96   : > { %v477_v26 = vpop.permute.xlu1 %476 }
  0x9a   : > { %v538_v40 = vpop.permute.xlu1 %537 }
  0xa6   : > { %v443_v8 = vpop.xlane.xlu0 %442 }
  0xa7   : > { %v448_v9 = vmul.f32 0.0625, %v443_v8 }
  0xa9   : > { %v450_v11 = vmul.f32 %v448_v9, %v448_v9  ;;  %v453_v16 = vsub.f32 %v1131_v0, %v448_v9 }
  0xaa   : > { %v447_v10 = vpop.xlane.xlu0 %446 }
  0xab   : > { %v449_v12 = vmul.f32 0.0625, %v447_v10 }
  0xad   : > { %v451_v13 = vsub.f32 %v449_v12, %v450_v11 }
  0xaf   : > { %v452_v14 = vmax.f32 %v451_v13, 0.0 }
  0xb1   : > { %v454_v15 = vadd.f32 1e-05, %v452_v14 }
  0xb3   : > { %934 = vrsqrt.f32 %v454_v15 }
  0xc0   : > { %v935_v17 = vpop.eup %934 }
  0xc1   : > { %v456_v19 = vmul.f32 %v935_v17, %v453_v16  ;;  %v844_v17 = vld [vmem:[%s1253_s12] ss:$0 sm:$0xff] }
  0xc3   : > { %v463_v21 = vmul.f32 %v835_v18, %v456_v19 }
  0xc5   : > { %v470_v22 = vadd.f32 %v836_v20, %v463_v21 }
  0xc7   : > { %v471_v23 = vpack.c.bf16 %v470_v22, %v470_v22 }
  0xc9   : > { %v485_v24 = vsel %vm483_vm2, %v471_v23, 0 }
  0xca   : > { %862 = vmatpush3.bf16.msra.mxu0 %v485_v24 }
  0xcb   : > { %873 = vmatprep.subr.bf16.mxu0 %v1004_v4 }
  0xcd   : > { %864 = vmatmul.mubr.msk.bf16.vlgmr.msra.gmra.mxu0 %vm479_vm3, %v472_v25 }
  0xce   : > { %875 = vmatprep.mubr.msk.bf16.mxu0 %vm1005_vm1, %v1004_v4  ;;  %874 = vmatpush3.bf16.msra.mxu0 %v931_v50 }
 0x18d   : > { %v521_v27 = vpop.f32.mrf.mxu0 }
 0x18e   : > { %v522_v28 = vadd.f32 %v521_v27, %v477_v26 }
 0x18f   : > { %v865_v29 = vpop.f32.mrf.mxu0 }
 0x190   : > { %v528_v30 = vmul.f32 0.70710677, %v522_v28  ;;  %v527_v34 = vmul.f32 0.5, %v522_v28 }
 0x191   : > { %v524_v31 = vpop.f32.mrf.mxu0 }
 0x192   : > { %936 = verf.f32 %v528_v30 }
 0x193   : > { %v866_v32 = vpop.f32.mrf.mxu0 }
 0x19f   : > { %v937_v33 = vpop.eup %936 }
 0x1a0   : > { %v530_v35 = vadd.f32 1.0, %v937_v33 }
 0x1a2   : > { %v531_v36 = vmul.f32 %v530_v35, %v527_v34 }
 0x1a4   : > { %v533_v37 = vpack.c.bf16 %v531_v36, %v531_v36 }
 0x1a6   : > { %v546_v38 = vsel %vm544_vm4, %v533_v37, 0 }
 0x1a7   : > { %868 = vmatpush3.bf16.msra.mxu1 %v546_v38 }
 0x1a8   : > { %879 = vmatprep.subr.bf16.mxu1 %v1004_v4 }
 0x1aa   : > { %870 = vmatmul.mubr.msk.bf16.vlgmr.msra.gmra.mxu1 %vm540_vm5, %v532_v39 }
 0x1ab   : > { %883 = vmatprep.mubr.msk.bf16.mxu1 %vm1005_vm1, %v1004_v4  ;;  %880 = vmatpush3.bf16.msra.mxu1 %v932_v3 }
 0x1ac   : > { %881 = vmatprep.subr.bf16.mxu1 %v1004_v4 }
 0x1af   : > { %882 = vmatpush3.bf16.msra.mxu1 %v933_v5 }
 0x26a   : > { %v582_v41 = vpop.f32.mrf.mxu1 }
 0x26b   : > { %v583_v42 = vadd.f32 %v582_v41, %v538_v40 }
 0x26c   : > { %v871_v43 = vpop.f32.mrf.mxu1 }
 0x26d   : > { %v588_v44 = vadd.f32 %v583_v42, %v1131_v0 }
 0x26e   : > { %v585_v45 = vpop.f32.mrf.mxu1 }
 0x26f   : > { %v591_v46 = vsel %vm440_vm0, %v588_v44, 0.0  ;;  %v594_v47 = vmul.f32 %v588_v44, %v588_v44 }
 0x270   : > { %592 = vadd.xlane.f32.xlu0 %v591_v46  ;;  %v872_v48 = vpop.f32.mrf.mxu1 }
 0x271   : > { %v595_v49 = vsel %vm440_vm0, %v594_v47, 0.0 }
 0x272   : > { %596 = vadd.xlane.f32.xlu1 %v595_v49 }
 0x2f9   : > { %v593_v51 = vpop.xlane.xlu0 %592 }
 0x2fa   : > { %v598_v52 = vmul.f32 0.0625, %v593_v51 }
 0x2fb   : > { %v597_v53 = vpop.xlane.xlu1 %596 }
 0x2fc   : > { %v600_v54 = vmul.f32 %v598_v52, %v598_v52  ;;  %v599_v55 = vmul.f32 0.0625, %v597_v53  ;;  %v603_v59 = vsub.f32 %v588_v44, %v598_v52 }
 0x2fe   : > { %v601_v56 = vsub.f32 %v599_v55, %v600_v54 }
 0x300   : > { %v602_v57 = vmax.f32 %v601_v56, 0.0 }
 0x302   : > { %v604_v58 = vadd.f32 1e-05, %v602_v57 }
 0x304   : > { %938 = vrsqrt.f32 %v604_v58 }
 0x311   : > { %v939_v60 = vpop.eup %938 }
 0x312   : > { %v606_v62 = vmul.f32 %v939_v60, %v603_v59 }
 0x314   : > { %v613_v0 = vmul.f32 %v839_v61, %v606_v62 }
 0x316   : > { %v620_v1 = vadd.f32 %v840_v63, %v613_v0 }
 0x318   : > { %v621_v2 = vpack.c.bf16 %v620_v1, %v620_v1 }
 0x31a   : > { %876 = vmatmul.mubr.msk.bf16.vlgmr.msra.gmra.mxu0 %vm637_vm6, %v621_v2 }
 0x3da   : > { %v675_v7 = vpop.f32.mrf.mxu0 }
 0x3db   : > { %v676_v8 = vadd.f32 %v841_v6, %v675_v7 }
 0x3dc   : > { %v877_v9 = vpop.f32.mrf.mxu0 }
 0x3dd   : > { %v682_v10 = vmul.f32 0.70710677, %v676_v8  ;;  %v681_v4 = vmul.f32 0.5, %v676_v8 }
 0x3de   : > { %v678_v11 = vpop.f32.mrf.mxu0 }
 0x3df   : > { %940 = verf.f32 %v682_v10 }
 0x3e0   : > { %v878_v12 = vpop.f32.mrf.mxu0 }
 0x3ec   : > { %v941_v13 = vpop.eup %940 }
 0x3ed   : > { %v684_v14 = vadd.f32 1.0, %v941_v13 }
 0x3ef   : > { %v685_v15 = vmul.f32 %v684_v14, %v681_v4 }
 0x3f1   : > { %v686_v16 = vpack.c.bf16 %v685_v15, %v685_v15 }
 0x3f3   : > { %884 = vmatmul.mubr.msk.bf16.vlgmr.msra.gmra.mxu1 %vm710_vm7, %v686_v16 }
 0x4b3   : > { %v748_v18 = vpop.f32.mrf.mxu1 }
 0x4b4   : > { %v749_v19 = vadd.f32 %v844_v17, %v748_v18 }
 0x4b5   : > { %v885_v20 = vpop.f32.mrf.mxu1 }
 0x4b6   : > { %v754_v21 = vadd.f32 %v749_v19, %v588_v44 }
 0x4b7   : > { %v751_v22 = vpop.f32.mrf.mxu1 }
 0x4b8   : > { %755 = vst.msk [vmem:[%s431_s22] sm:$0xf] %vm440_vm0, %v754_v21 }
 0x4b9   : > { %v886_v23 = vpop.f32.mrf.mxu1 }
 0x4ba   : > { %955 = shalt.err (!%p952_p3)
}
 0x4bb   : > { %s956_s21 = scalar_lea.hbm %s1199_s1, 64  ;;  %s960_s24 = scalar_lea.hbm %s1254_s13, 128 }
 0x4bc   : > { %p957_p4 = scmp.ne.s32.totalorder %s1199_s1, %s956_s21  ;;  %p961_p9 = scmp.lt.s32.totalorder %s1199_s1, %s1254_s13 }
 0x4bd   : > { %p962_p10 = scmp.lt.s32.totalorder %s960_s24, %s956_s21 }
 0x4be   : > { %p958_p7 = pnand %p957_p4, %p1116_p5 }
 0x4bf   : > { %p963_p11 = por %p962_p10, %p961_p9 }
 0x4c0   : > { %p959_p8 = pneg %p958_p7 }
 0x4c2   : > { %p964_p12 = pnand %p963_p11, %p959_p8 }
 0x4c4   : > { %967 = shalt.err (!%p964_p12)
}
 0x4c5   : > { %887 = dma.vmem_to_hbm [thread:$0]  (%p1116_p5), %s1201_s23, 64, %s1199_s1, %s757_s29  }
 0x4c6 PF: > { %p893_p13 = scmp.ge.s32.totalorder %s1002_s28, 2  ;;  %s782_s15 = sand.u32 1, %s990_s25  }
 0x4c7   : > { %s783_s2 = scalar_lea.sflag [#allocation3], %s782_s15 }
 0x4c8   : > { %p890_p0 = pnand %p893_p13, %p1120_p6 }
 0x4ca   : > { %p891_p1 = pneg %p890_p0 }
 0x4cc   : > { %985 = dma.done.wait (%p891_p1), %s783_s2, 64  }
 0x4cd   : > { %987 = vsyncadd (%p891_p1), %s783_s2, 4294967232  ;;  %p23_p2 = scmp.ge.s32.totalorder %s1103_s14, 4   ;;  %s1263_s25 = smov %s994_s26 }
 0x4ce   : > { %s1264_s26 = smov %s998_s27  ;;  %s1265_s27 = smov %s1114_s17 }
 0x4cf   : > { %s1266_s28 = smov %s1103_s14  ;;  %25 = sbr.rel (!%p23_p2) target bundleno = 7 (0x7), region = 107 }
 0x4d4   :  { %788 = vsyncpa [#allocation3], 1 }
 0x4d5   :  { %790 = vsyncpa [#allocation3 + $0x1], 1 }

</bundles_post_ra>
